<compile_context>
chip_gen: v6e
topology: v6e:2x2x1
jax: 0.10.0
libtpu: 0.0.40
codegen_flags: <defaults>
</compile_context>

<pallas_src>
import functools

import jax
import jax.numpy as jnp
from jax.experimental import pallas as pl
from jax.experimental.pallas import tpu as pltpu


def _round_up(x, m):
    return ((x + m - 1) // m) * m


def _fusion_kernel(img_ref, txt_ref, wi_ref, wt_ref, bi_ref, bt_ref, o_ref,
                   *, groups_per_step, o_pad):
    k = pl.program_id(1)

    @pl.when(k == 0)
    def _init():
        o_ref[...] = jnp.zeros_like(o_ref)

    gn = groups_per_step * o_pad
    off = pl.multiple_of(k * gn, gn)          # biases are fully resident; slice chunk k
    bi = bi_ref[:, pl.ds(off, gn)]
    bt = bt_ref[:, pl.ds(off, gn)]

    # k-th gn-wide column block of each projection (MXU, f32 accumulation).
    img_p = jnp.dot(img_ref[...], wi_ref[...],
                    preferred_element_type=jnp.float32) + bi
    txt_p = jnp.dot(txt_ref[...], wt_ref[...],
                    preferred_element_type=jnp.float32) + bt

    # TODO(synk): training-mode dropout not implemented (eval / identity only).
    # TODO(synk): exp_in != 1 (non-first layer chaining) not implemented.
    prod = img_p * txt_p                       # (block_b, gn) f32

    # Sum the groups_per_step O_pad-wide slabs (static, lane-aligned slices).
    partial = prod[:, 0:o_pad]
    for g in range(1, groups_per_step):
        partial = partial + prod[:, g * o_pad:(g + 1) * o_pad]

    o_ref[...] += partial                      # output block doubles as accumulator

    @pl.when(k == pl.num_programs(1) - 1)
    def _finalize():
        z = o_ref[...]
        sumsq = jnp.sum(z * z, axis=-1, keepdims=True)
        # torch F.normalize: z / max(||z||, 1e-12) == z * rsqrt(max(||z||^2, 1e-24))
        o_ref[...] = z * jax.lax.rsqrt(jnp.maximum(sumsq, 1e-24))


def prepare_fusion_params(w_i, b_i, w_t, b_t, *, K, O, groups_per_step=None,
                          compute_dtype=jnp.bfloat16):
    """One-time prep: permute columns from (o*K + k) order to group-major
    (k*O_pad + o) order, zero-pad O to a lane multiple and K to a multiple of
    groups_per_step, cast weights to the MXU compute dtype."""
    O_pad = _round_up(O, 128)
    if groups_per_step is None:
        # Widen the per-step N dimension to >= 256 when O_pad is small
        # (fills the 256-wide MXU on v6e/v7x; also halves grid-step overhead).
        groups_per_step = max(1, min(K, 256 // O_pad)) if O_pad < 256 else 1
    g = int(groups_per_step)
    Kp = _round_up(K, g)

    def prep(w, b):
        in_f = w.shape[0]
        w_r = jnp.asarray(w).reshape(in_f, O, K).transpose(0, 2, 1)   # (in, K, O)
        b_r = jnp.asarray(b).reshape(1, O, K).transpose(0, 2, 1)      # (1,  K, O)
        w_r = jnp.pad(w_r, ((0, 0), (0, Kp - K), (0, O_pad - O)))
        b_r = jnp.pad(b_r, ((0, 0), (0, Kp - K), (0, O_pad - O)))
        return (w_r.reshape(in_f, Kp * O_pad).astype(compute_dtype),
                b_r.reshape(1, Kp * O_pad).astype(jnp.float32))

    wi_p, bi_p = prep(w_i, b_i)
    wt_p, bt_p = prep(w_t, b_t)
    return {
        "wi": wi_p, "bi": bi_p, "wt": wt_p, "bt": bt_p,
        "K": K, "O": O, "O_pad": O_pad, "Kp": Kp,
        "groups_per_step": g, "compute_dtype": compute_dtype,
    }


def fusion_forward_prepared(img_feat, txt_feat, params, *, block_b=256,
                            vmem_limit_bytes=None):
    cd = params["compute_dtype"]
    O, O_pad, Kp, g = params["O"], params["O_pad"], params["Kp"], params["groups_per_step"]
    GN = g * O_pad
    n_k = Kp // g

    B, img_dim = img_feat.shape
    txt_dim = txt_feat.shape[1]

    # Batch tiling: big tiles are the main lever; clamp for small batches.
    B_min = _round_up(B, 16)                       # bf16 sublane friendly
    block_b = _round_up(min(block_b, B_min), 8)
    B_pad = _round_up(B, block_b)

    img = img_feat.astype(cd)
    txt = txt_feat.astype(cd)
    if B_pad > B:
        img = jnp.pad(img, ((0, B_pad - B), (0, 0)))
        txt = jnp.pad(txt, ((0, B_pad - B), (0, 0)))

    if vmem_limit_bytes is None:
        isz = jnp.dtype(cd).itemsize
        est = (2 * block_b * (img_dim + txt_dim) * isz      # activations (dbl-buffered)
               + 2 * (img_dim + txt_dim) * GN * isz         # weight tiles (dbl-buffered)
               + 2 * 2 * Kp * O_pad * 4                     # resident biases (f32)
               + 2 * block_b * O_pad * 4)                   # output/accumulator (f32)
        vmem_limit_bytes = min(100 * 1024 * 1024,
                               max(32 * 1024 * 1024, int(est * 1.5)))

    grid = (B_pad // block_b, n_k)                 # reduction axis (k) last
    kernel = functools.partial(_fusion_kernel, groups_per_step=g, o_pad=O_pad)

    z = pl.pallas_call(
        kernel,
        out_shape=jax.ShapeDtypeStruct((B_pad, O_pad), jnp.float32),
        grid_spec=pltpu.PrefetchScalarGridSpec(
            num_scalar_prefetch=0,
            grid=grid,
            in_specs=[
                pl.BlockSpec((block_b, img_dim), lambda b, k: (b, 0)),
                pl.BlockSpec((block_b, txt_dim), lambda b, k: (b, 0)),
                pl.BlockSpec((img_dim, GN), lambda b, k: (0, k)),
                pl.BlockSpec((txt_dim, GN), lambda b, k: (0, k)),
                pl.BlockSpec((1, Kp * O_pad), lambda b, k: (0, 0)),   # bias_i resident
                pl.BlockSpec((1, Kp * O_pad), lambda b, k: (0, 0)),   # bias_t resident
            ],
            # Output block is resident across k and doubles as the accumulator.
            out_specs=pl.BlockSpec((block_b, O_pad), lambda b, k: (b, 0)),
        ),
        compiler_params=pltpu.CompilerParams(
            dimension_semantics=("parallel", "arbitrary"),
            vmem_limit_bytes=vmem_limit_bytes),
    )(img, txt, params["wi"], params["wt"], params["bi"], params["bt"])

    return z[:B, :O].reshape(B, -1, O)             # (B, 1, O) for 2-D inputs


def fusion_forward(img_feat, txt_feat, w_i, b_i, w_t, b_t, *, K, O,
                   block_b=256, compute_dtype=jnp.bfloat16):
    """Convenience wrapper (prep + forward). For repeated calls, call
    prepare_fusion_params once and reuse it with fusion_forward_prepared."""
    params = prepare_fusion_params(w_i, b_i, w_t, b_t, K=K, O=O,
                                   compute_dtype=compute_dtype)
    return fusion_forward_prepared(img_feat, txt_feat, params, block_b=block_b)


def _reference(img_feat, txt_feat, w_i, b_i, w_t, b_t, *, K, O):
    ip = img_feat @ w_i + b_i
    tp = txt_feat @ w_t + b_t
    e = ip * tp
    B = e.shape[0]
    z = e.reshape(B, O, K).mean(axis=-1) * K           # AvgPool1d(K, stride=K) * K
    zf = z.reshape(B, -1)
    n = jnp.sqrt(jnp.sum(zf * zf, axis=-1, keepdims=True))
    zf = zf / jnp.maximum(n, 1e-12)
    return zf.reshape(B, -1, O)


if __name__ == "__main__":
    # Small shapes consistent with the module's forward.
    B = 4
    IMG_FEAT = 32
    TXT_FEAT = 32
    K = 4
    O = 64
    KO = K * O

    key = jax.random.PRNGKey(0)
    k_img, k_txt, k_wi, k_bi, k_wt, k_bt = jax.random.split(key, 6)

    img_feat = jax.random.normal(k_img, (B, IMG_FEAT), dtype=jnp.float32)
    txt_feat = jax.random.normal(k_txt, (B, TXT_FEAT), dtype=jnp.float32)

    # nn.Linear(img_feat_size, K*O) / nn.Linear(txt_feat_size, K*O) params,
    # stored as (in, out) so the kernel computes x @ W + b.
    w_i = jax.random.normal(k_wi, (IMG_FEAT, KO), dtype=jnp.float32) * 0.05
    b_i = jax.random.normal(k_bi, (1, KO), dtype=jnp.float32) * 0.05
    w_t = jax.random.normal(k_wt, (TXT_FEAT, KO), dtype=jnp.float32) * 0.05
    b_t = jax.random.normal(k_bt, (1, KO), dtype=jnp.float32) * 0.05

    # One-time prep (hoisted out of the per-call path), then the kernel call.
    params = prepare_fusion_params(w_i, b_i, w_t, b_t, K=K, O=O)
    out = fusion_forward_prepared(img_feat, txt_feat, params)
    out = jax.block_until_ready(out)
    assert out.shape == (B, 1, O), out.shape

    # Tight check: reference fed the same bf16-rounded activations/weights
    # (kernel uses bf16 MXU inputs with f32 accumulation and f32 bias/epilogue).
    q = lambda x: x.astype(jnp.bfloat16).astype(jnp.float32)
    ref_q = _reference(q(img_feat), q(txt_feat), q(w_i), b_i, q(w_t), b_t, K=K, O=O)
    assert jnp.allclose(out, ref_q, atol=1e-3, rtol=1e-3), "mismatch vs bf16-input reference"

    # Loose check against the full-f32 PyTorch-equivalent reference.
    ref = _reference(img_feat, txt_feat, w_i, b_i, w_t, b_t, K=K, O=O)
    assert jnp.allclose(out, ref, atol=5e-2, rtol=5e-2), "mismatch vs f32 reference"

    print("KERNEL_OK")
</pallas_src>

<mosaic_0001>
module attributes {stable_mosaic.version = 11 : i64} {
  func.func @_fusion_kernel(%arg0: i32, %arg1: i32, %arg2: memref<16x32xbf16, #tpu.memory_space<vmem>>, %arg3: memref<16x32xbf16, #tpu.memory_space<vmem>>, %arg4: memref<32x256xbf16, #tpu.memory_space<vmem>>, %arg5: memref<32x256xbf16, #tpu.memory_space<vmem>>, %arg6: memref<1x512xf32, #tpu.memory_space<vmem>>, %arg7: memref<1x512xf32, #tpu.memory_space<vmem>>, %arg8: memref<16x128xf32, #tpu.memory_space<vmem>>) attributes {dimension_semantics = [#tpu.dimension_semantics<parallel>, #tpu.dimension_semantics<arbitrary>], iteration_bounds = array<i64: 1, 2>, scalar_prefetch = 0 : i64, scratch_operands = 0 : i64, tpu.core_type = #tpu.core_type<tc>, window_params = [{transform_indices = @transform_0, window_bounds = array<i64: 16, 32>}, {transform_indices = @transform_1, window_bounds = array<i64: 16, 32>}, {transform_indices = @transform_2, window_bounds = array<i64: 32, 256>}, {transform_indices = @transform_3, window_bounds = array<i64: 32, 256>}, {pipeline_mode = #tpu.pipeline_mode<synchronous>, transform_indices = @transform_4, window_bounds = array<i64: 1, 512>}, {pipeline_mode = #tpu.pipeline_mode<synchronous>, transform_indices = @transform_5, window_bounds = array<i64: 1, 512>}, {transform_indices = @transform_6, window_bounds = array<i64: 16, 128>}]} {
    %c0_i32 = arith.constant 0 : i32
    %0 = arith.cmpi eq, %arg1, %c0_i32 : i32
    %1 = arith.extui %0 : i1 to i32
    %c0_i32_0 = arith.constant 0 : i32
    %2 = arith.cmpi ne, %1, %c0_i32_0 : i32
    scf.if %2 {
      %cst_16 = arith.constant 0.000000e+00 : f32
      %29 = vector.broadcast %cst_16 : f32 to vector<16x128xf32>
      %c0_17 = arith.constant 0 : index
      %c0_18 = arith.constant 0 : index
      %30 = vector.load %arg8[%c0_17, %c0_18] : memref<16x128xf32, #tpu.memory_space<vmem>>, vector<16x128xf32>
      tpu.vector_store %arg8[%c0_17, %c0_18], %29 {strides = array<i32>} : memref<16x128xf32, #tpu.memory_space<vmem>>, vector<16x128xf32>,
    } else {
    }
    %c256_i32 = arith.constant 256 : i32
    %3 = arith.muli %arg1, %c256_i32 : i32
    %4 = tpu.assume_multiple %3, 256 : i32
    %c0 = arith.constant 0 : index
    %5 = arith.index_cast %4 : i32 to index
    %6 = vector.load %arg6[%c0, %5] : memref<1x512xf32, #tpu.memory_space<vmem>>, vector<1x256xf32>
    %c0_1 = arith.constant 0 : index
    %7 = arith.index_cast %4 : i32 to index
    %8 = vector.load %arg7[%c0_1, %7] : memref<1x512xf32, #tpu.memory_space<vmem>>, vector<1x256xf32>
    %c0_2 = arith.constant 0 : index
    %c0_3 = arith.constant 0 : index
    %9 = vector.load %arg2[%c0_2, %c0_3] : memref<16x32xbf16, #tpu.memory_space<vmem>>, vector<16x32xbf16>
    %c0_4 = arith.constant 0 : index
    %c0_5 = arith.constant 0 : index
    %10 = vector.load %arg4[%c0_4, %c0_5] : memref<32x256xbf16, #tpu.memory_space<vmem>>, vector<32x256xbf16>
    %cst = arith.constant dense<0.000000e+00> : vector<16x256xf32>
    %11 = tpu.matmul %9, %10, %cst {dimension_numbers = #tpu.dot_dimension_numbers<[1], [0], [0], [1], [0, 0, 1, 1], [], []>} : vector<16x32xbf16>, vector<32x256xbf16>, vector<16x256xf32> -> vector<16x256xf32>
    %12 = vector.broadcast %6 : vector<1x256xf32> to vector<16x256xf32>
    %13 = arith.addf %11, %12 : vector<16x256xf32>
    %c0_6 = arith.constant 0 : index
    %c0_7 = arith.constant 0 : index
    %14 = vector.load %arg3[%c0_6, %c0_7] : memref<16x32xbf16, #tpu.memory_space<vmem>>, vector<16x32xbf16>
    %c0_8 = arith.constant 0 : index
    %c0_9 = arith.constant 0 : index
    %15 = vector.load %arg5[%c0_8, %c0_9] : memref<32x256xbf16, #tpu.memory_space<vmem>>, vector<32x256xbf16>
    %cst_10 = arith.constant dense<0.000000e+00> : vector<16x256xf32>
    %16 = tpu.matmul %14, %15, %cst_10 {dimension_numbers = #tpu.dot_dimension_numbers<[1], [0], [0], [1], [0, 0, 1, 1], [], []>} : vector<16x32xbf16>, vector<32x256xbf16>, vector<16x256xf32> -> vector<16x256xf32>
    %17 = vector.broadcast %8 : vector<1x256xf32> to vector<16x256xf32>
    %18 = arith.addf %16, %17 : vector<16x256xf32>
    %19 = arith.mulf %13, %18 : vector<16x256xf32>
    %20 = vector.extract_strided_slice %19 {offsets = [0, 0], sizes = [16, 128], strides = [1, 1]} : vector<16x256xf32> to vector<16x128xf32>
    %21 = vector.extract_strided_slice %19 {offsets = [0, 128], sizes = [16, 128], strides = [1, 1]} : vector<16x256xf32> to vector<16x128xf32>
    %22 = arith.addf %20, %21 : vector<16x128xf32>
    %c0_11 = arith.constant 0 : index
    %c0_12 = arith.constant 0 : index
    %23 = vector.load %arg8[%c0_11, %c0_12] : memref<16x128xf32, #tpu.memory_space<vmem>>, vector<16x128xf32>
    %24 = arith.addf %23, %22 : vector<16x128xf32>
    %c0_13 = arith.constant 0 : index
    %c0_14 = arith.constant 0 : index
    %25 = vector.load %arg8[%c0_13, %c0_14] : memref<16x128xf32, #tpu.memory_space<vmem>>, vector<16x128xf32>
    tpu.vector_store %arg8[%c0_13, %c0_14], %24 {strides = array<i32>} : memref<16x128xf32, #tpu.memory_space<vmem>>, vector<16x128xf32>,
    %c1_i32 = arith.constant 1 : i32
    %26 = arith.cmpi eq, %arg1, %c1_i32 : i32
    %27 = arith.extui %26 : i1 to i32
    %c0_i32_15 = arith.constant 0 : i32
    %28 = arith.cmpi ne, %27, %c0_i32_15 : i32
    scf.if %28 {
      %c0_16 = arith.constant 0 : index
      %c0_17 = arith.constant 0 : index
      %29 = vector.load %arg8[%c0_16, %c0_17] : memref<16x128xf32, #tpu.memory_space<vmem>>, vector<16x128xf32>
      %30 = arith.mulf %29, %29 : vector<16x128xf32>
      %cst_18 = arith.constant dense<0.000000e+00> : vector<16xf32>
      %31 = vector.multi_reduction <add>, %30, %cst_18 [1] : vector<16x128xf32> to vector<16xf32>
      %32 = vector.shape_cast %31 : vector<16xf32> to vector<16x1xf32>
      %cst_19 = arith.constant 1.000000e-24 : f32
      %33 = vector.broadcast %cst_19 : f32 to vector<16x1xf32>
      %34 = arith.maximumf %32, %33 : vector<16x1xf32>
      %35 = math.rsqrt %34 : vector<16x1xf32>
      %36 = vector.broadcast %35 : vector<16x1xf32> to vector<16x128xf32>
      %37 = arith.mulf %29, %36 : vector<16x128xf32>
      %c0_20 = arith.constant 0 : index
      %c0_21 = arith.constant 0 : index
      %38 = vector.load %arg8[%c0_20, %c0_21] : memref<16x128xf32, #tpu.memory_space<vmem>>, vector<16x128xf32>
      tpu.vector_store %arg8[%c0_20, %c0_21], %37 {strides = array<i32>} : memref<16x128xf32, #tpu.memory_space<vmem>>, vector<16x128xf32>,
    } else {
    }
    return
  }
  func.func @transform_0(%arg0: i32, %arg1: i32) -> (i32, i32) {
    %c0_i32 = arith.constant 0 : i32
    %c0_i32_0 = arith.constant 0 : i32
    return %arg0, %c0_i32 : i32, i32
  }
  func.func @transform_1(%arg0: i32, %arg1: i32) -> (i32, i32) {
    %c0_i32 = arith.constant 0 : i32
    %c0_i32_0 = arith.constant 0 : i32
    return %arg0, %c0_i32 : i32, i32
  }
  func.func @transform_2(%arg0: i32, %arg1: i32) -> (i32, i32) {
    %c0_i32 = arith.constant 0 : i32
    %c0_i32_0 = arith.constant 0 : i32
    return %c0_i32, %arg1 : i32, i32
  }
  func.func @transform_3(%arg0: i32, %arg1: i32) -> (i32, i32) {
    %c0_i32 = arith.constant 0 : i32
    %c0_i32_0 = arith.constant 0 : i32
    return %c0_i32, %arg1 : i32, i32
  }
  func.func @transform_4(%arg0: i32, %arg1: i32) -> (i32, i32) {
    %c0_i32 = arith.constant 0 : i32
    %c0_i32_0 = arith.constant 0 : i32
    %c0_i32_1 = arith.constant 0 : i32
    return %c0_i32, %c0_i32_0 : i32, i32
  }
  func.func @transform_5(%arg0: i32, %arg1: i32) -> (i32, i32) {
    %c0_i32 = arith.constant 0 : i32
    %c0_i32_0 = arith.constant 0 : i32
    %c0_i32_1 = arith.constant 0 : i32
    return %c0_i32, %c0_i32_0 : i32, i32
  }
  func.func @transform_6(%arg0: i32, %arg1: i32) -> (i32, i32) {
    %c0_i32 = arith.constant 0 : i32
    %c0_i32_0 = arith.constant 0 : i32
    return %arg0, %c0_i32 : i32, i32
  }
}

</mosaic_0001>

<bundles_post_ra>
// kernel: tpu_custom_call.1
= control target key start
LH: loop header
LB: loop body
LE: loop exit
PB: predicated region body
PF: predicated region fallthrough
CT: control target
= control target key end

     0   :  { %s1291_s0 = inlined_call_operand.hbm [shape: bf16[16,32], index: 0, kind: input, shape index: {}]   ;;  %s1292_s1 = inlined_call_operand.hbm [shape: bf16[16,32], index: 1, kind: input, shape index: {}]   ;;  %s1293_s2 = inlined_call_operand.hbm [shape: bf16[32,512], index: 2, kind: input, shape index: {}]   ;;  %s1294_s3 = inlined_call_operand.hbm [shape: bf16[32,512], index: 3, kind: input, shape index: {}]   ;;  %s1295_s4 = inlined_call_operand.vmem [shape: f32[1,512], index: 4, kind: input, shape index: {}]   ;;  %s1296_s5 = inlined_call_operand.vmem [shape: f32[1,512], index: 5, kind: input, shape index: {}]   ;;  %s1297_s6 = inlined_call_operand.hbm [shape: f32[16,128], index: 6, kind: output, shape index: {}]  }
   0x1   :  { %1302 = sst [smem:[#allocation16_spill]] %s1291_s0 }
   0x2   :  { %1303 = sst [smem:[#allocation17_spill]] %s1293_s2 }
   0x3   :  { %11 = vsyncpa [#allocation3], 0 }
   0x4   :  { %12 = vsyncpa [#allocation6], 0 }
   0x5   :  { %13 = vsyncpa [#allocation4], 0  ;;  %s1098_s21 = smov 0   ;;  %s1100_s22 = smov 0  }
   0x6   :  { %s1102_s23 = smov 0   ;;  %s1104_s24 = smov 0  }
   0x7   :  { %s1106_s25 = smov 0   ;;  %s1108_s26 = smov 0  }
   0x8 LB: > { %s1127_s27 = sadd.s32 4294967295, %s1047_s26   ;;  %s90_s28 = sadd.s32 1, %s1035_s23  ;;  %s1047_s26 = sphi %s1108_s26, %s19_s26   ;;  %s1043_s25 = sphi %s1106_s25, %s1324_s25   ;;  %s1039_s24 = sphi %s1104_s24, %s1323_s24   ;;  %s1035_s23 = sphi %s1102_s23, %s1322_s23   ;;  %s1031_s22 = sphi %s1100_s22, %s1321_s22   ;;  %s1027_s21 = sphi %s1098_s21, %s1320_s21  }
   0x9   : > { %p97_p0 = scmp.ne.s32.totalorder %s1035_s23, %s1031_s22  ;;  %p98_p1 = scmp.eq.s32.totalorder %s1047_s26, 0 }
   0xa   : > { %p103_p2 = scmp.ne.s32.totalorder %s1031_s22, %s1027_s21  ;;  %p1298_p3 = scmp.eq.s32.totalorder %s1127_s27, 0 }
   0xb   : > { %p99_p4 = por %p98_p1, %p97_p0  ;;  %p702_p5 = scmp.ge.s32.totalorder %s1047_s26, 1 }
   0xc   : > { %p1138_p6 = por %p1298_p3, %p103_p2  ;;  %p208_p7 = scmp.lt.s32.totalorder %s1047_s26, 3 }
   0xd   : > { %s1049_s7 = smov [#allocation2]   ;;  %p770_p10 = scmp.lt.s32.totalorder %s1047_s26, 2 }
   0xe   : > { %p1143_p8 = pnand %p702_p5, %p208_p7  ;;  %s223_s8 = sshll.u32 %s1049_s7, 4  ;;  %s224_s8 = int_to_ptr.vmem [resolvable:$true] %s223_s8 }
   0xf   : > { %p1156_p12 = pnand %p770_p10, %p99_p4  ;;  %s28_s11 = sadd.s32 1, %s1043_s25 }
  0x10   : > { %p754_p9 = pneg %p1143_p8  ;;  %s864_s12 = scalar_lea.vmem %s224_s8, 128 }
  0x11   : > { %p865_p0 = scmp.ne.s32.totalorder %s224_s8, %s864_s12  ;;  %p872_p5 = scmp.lt.s32.totalorder %s224_s8, %s224_s8 }
  0x12   : > { %p1152_p11 = pnand %p754_p9, %p1298_p3  ;;  %p873_p7 = scmp.lt.s32.totalorder %s864_s12, %s864_s12 }
  0x14   : > { %p855_p13 = pneg %p1152_p11  ;;  %p874_p9 = por %p873_p7, %p872_p5 }
  0x16   : > { %p867_p1 = pnand %p865_p0, %p855_p13 }
  0x18   : > { %p868_p2 = pneg %p867_p1 }
  0x1a   : > { %p875_p3 = pnand %p874_p9, %p868_p2 }
  0x1c   : > { %878 = shalt.err (!%p875_p3)
}
  0x1d   : > { %s1299_s13 = smov 64   ;;  %s1300_s14 = smov 4  }
  0x1e   : > { %s1308_s0 = sld [smem:[#allocation16_spill]]  ;;  %p29_p3 = scmp.ge.s32.totalorder %s28_s11, 2 }
  0x1f   : > { %s259_s17 = sand.u32 1, %s1047_s26   ;;  %s261_s18 = sand.u32 1, %s1035_s23  }
  0x20   : > { %s1326_s11 = smov (%p29_p3, %s28_s11), 0  ;;  %s1178_s19 = sshll.u32 %s261_s18, 5 }
  0x21   : > { %1309 = sst [smem:[#allocation14_spill]] %s1326_s11  ;;  %s87_s20 = ssub.s32 %s1043_s25, %s1326_s11 }
  0x22   : > { %p88_p4 = scmp.eq.s32.totalorder %s87_s20, 0  ;;  %s736_s21 = sshll.u32 %s1043_s25, 7 }
  0x23   : > { %s1310_s2 = sld [smem:[#allocation17_spill]]  ;;  %s263_s16 = scalar_lea.vmem [#allocation7], %s1178_s19 }
  0x24   : > { %757 = dma.hbm_to_vmem [thread:$0]  (!%p1152_p11), %s1308_s0, 128, %s224_s8, [#allocation3], %s1299_s13, %s1299_s13, %s1300_s14  }
  0x25   : > { %s270_s8 = sshll.u32 %s263_s16, 4  ;;  %s1194_s14 = scalar_lea.sflag [#allocation3], %s259_s17  ;;  %s271_s8 = int_to_ptr.vmem [resolvable:$true] %s270_s8 }
  0x26   : > { %s1192_s13 = scalar_select %p88_p4, %s1035_s23, %s90_s28  }
  0x27   : > { %p881_p10 = pneg %p1156_p12  ;;  %s892_s18 = scalar_lea.vmem %s271_s8, 512 }
  0x28   : > { %1311 = sst [smem:[#allocation15_spill]] %s1192_s13  ;;  %p893_p0 = scmp.ne.s32.totalorder %s271_s8, %s892_s18 }
  0x29   : > { %s269_s15 = scalar_lea.hbm %s1310_s2, %s736_s21  ;;  %s1052_s20 = smov [#allocation7]  }
  0x2a   : > { %p895_p1 = pnand %p893_p0, %p881_p10  ;;  %s897_s0 = sshll.u32 %s1052_s20, 4  ;;  %s898_s0 = int_to_ptr.vmem [resolvable:$false] %s897_s0 }
  0x2b   : > { %s899_s7 = scalar_lea.vmem %s898_s0, 1024  ;;  %p900_p5 = scmp.lt.s32.totalorder %s271_s8, %s898_s0 }
  0x2c   : > { %p896_p2 = pneg %p895_p1  ;;  %p901_p7 = scmp.lt.s32.totalorder %s899_s7, %s892_s18 }
  0x2e   : > { %p902_p9 = por %p901_p7, %p900_p5 }
  0x30   : > { %p903_p3 = pnand %p902_p9, %p896_p2 }
  0x32   : > { %906 = shalt.err (!%p903_p3)
}
  0x33   : > { %s1053_s28 = smov 256   ;;  %s1054_s17 = smov 128  }
  0x34   : > { %s1055_s12 = smov 8   ;;  %s1056_s16 = smov [#allocation5]  }
  0x35   : > { %764 = dma.hbm_to_vmem [thread:$0]  (!%p1156_p12), %s269_s15, 512, %s271_s8, %s1194_s14, %s1053_s28, %s1054_s17, %s1055_s12  }
  0x36   : > { %s239_s20 = sshll.u32 %s1056_s16, 4  ;;  %s1212_s7 = scalar_lea.hbm %s1294_s3, %s736_s21  ;;  %s240_s20 = int_to_ptr.vmem [resolvable:$true] %s239_s20 }
  0x37   : > { %s284_s2 = scalar_lea.vmem [#allocation8], %s1178_s19  ;;  %s918_s13 = scalar_lea.vmem %s240_s20, 128 }
  0x38   : > { %s291_s11 = sshll.u32 %s284_s2, 4  ;;  %p919_p4 = scmp.ne.s32.totalorder %s240_s20, %s918_s13  ;;  %s292_s11 = int_to_ptr.vmem [resolvable:$true] %s291_s11 }
  0x39   : > { %p926_p2 = scmp.lt.s32.totalorder %s240_s20, %s240_s20  ;;  %p927_p5 = scmp.lt.s32.totalorder %s918_s13, %s918_s13 }
  0x3a   : > { %p921_p0 = pnand %p919_p4, %p855_p13 }
  0x3b   : > { %p928_p7 = por %p927_p5, %p926_p2 }
  0x3c   : > { %p922_p1 = pneg %p921_p0 }
  0x3e   : > { %p929_p9 = pnand %p928_p7, %p922_p1 }
  0x40   : > { %932 = shalt.err (!%p929_p9)
}
  0x41   : > { %s1312_s15 = smov 4   ;;  %s1313_s8 = smov 64  }
  0x42   : > { %760 = dma.hbm_to_vmem [thread:$0]  (!%p1152_p11), %s1292_s1, 128, %s240_s20, [#allocation6], %s1313_s8, %s1313_s8, %s1312_s15  }
  0x43   : > { %s946_s2 = scalar_lea.vmem %s292_s11, 512  ;;  %s1057_s13 = smov [#allocation8]  }
  0x44   : > { %p947_p3 = scmp.ne.s32.totalorder %s292_s11, %s946_s2  ;;  %s951_s19 = sshll.u32 %s1057_s13, 4  ;;  %s952_s19 = int_to_ptr.vmem [resolvable:$false] %s951_s19 }
  0x45   : > { %s953_s0 = scalar_lea.vmem %s952_s19, 1024  ;;  %p954_p0 = scmp.lt.s32.totalorder %s292_s11, %s952_s19 }
  0x46   : > { %p949_p13 = pnand %p947_p3, %p881_p10  ;;  %p955_p1 = scmp.lt.s32.totalorder %s953_s0, %s946_s2 }
  0x48   : > { %p950_p4 = pneg %p949_p13  ;;  %p956_p2 = por %p955_p1, %p954_p0 }
  0x4a   : > { %p957_p5 = pnand %p956_p2, %p950_p4 }
  0x4c   : > { %960 = shalt.err (!%p957_p5)
}
  0x4d   : > { %767 = dma.hbm_to_vmem [thread:$0]  (!%p1156_p12), %s1212_s7, 512, %s292_s11, %s1194_s14, %s1053_s28, %s1054_s17, %s1055_s12  }
  0x4e   : > { %303 = sbr.rel (%p1143_p8) target bundleno = 501 (0x1f5), region = 44  ;;  %p1314_p11 = scmp.eq.s32.totalorder (!%p1143_p8), %s1127_s27, 0 }
  0x53   : > { %1010 = dma.done.wait (%p1314_p11), [#allocation3], 128   ;;  %p1315_p10 = pmov %p1314_p11 }
  0x55   : > { %1012 = vsyncadd (%p1315_p10), [#allocation3], 4294967168  ;;  %p1316_p7 = pmov %p1315_p10 }
  0x57   : > { %1014 = dma.done.wait (%p1316_p7), [#allocation6], 128   ;;  %p1317_p9 = pmov %p1316_p7 }
  0x58   : > { %s313_s9 = sand.u32 1, %s1127_s27   ;;  %s315_s10 = sand.u32 1, %s1031_s22  }
  0x59   : > { %1016 = vsyncadd (%p1317_p9), [#allocation6], 4294967168  ;;  %s715_s11 = sshll.u32 %s315_s10, 5  ;;  %s314_s30 = scalar_lea.sflag [#allocation3], %s313_s9 }
  0x5a   : > { %s317_s14 = scalar_lea.vmem [#allocation7], %s715_s11 }
  0x5b   : > { %1018 = dma.done.wait (%p1138_p6), %s314_s30, 1024  }
  0x5c   : > { %1020 = vsyncadd (%p1138_p6), %s314_s30, 4294966272  ;;  %s326_s28 = scalar_lea.vmem [#allocation8], %s715_s11  ;;  %p717_p8 = scmp.ne.s32.totalorder %s1039_s24, 0 }
  0x5e   : > { %364 = sbr.rel (%p717_p8) target bundleno = 101 (0x65), region = 64 }
  0x63   : > { %v1058_v0 = vmov 0.0  }
  0x64   : > { %365 = vst [vmem:[#allocation9] sm:$0xff] %v1058_v0  ;;  %366 = vst [vmem:[#allocation9 + $0x8] sm:$0xff] %v1058_v0 }
  0x65 PF: > { %v835_v1 = vld [vmem:[%s317_s14 + $0x14] ss:$8 sps:$4 sm:$0xff]   ;;  %v1059_v3 = vmov 0   ;;  %v839_v4 = vld [vmem:[%s317_s14 + $0x10] ss:$8 sps:$4 sm:$0xff]   ;;  %vm416_vm0 = vcmask 261120   ;;  %v381_v12 = vlaneseq }
  0x66   : > { %v837_v2 = vld [vmem:[%s326_s28 + $0x14] ss:$8 sps:$4 sm:$0xff]   ;;  %452 = vmatprep.mubr.bf16.mxu0 %v1059_v3  ;;  %540 = vmatprep.mubr.bf16.mxu1 %v1059_v3  ;;  %v840_v5 = vld [vmem:[%s326_s28 + $0x10] ss:$8 sps:$4 sm:$0xff]   ;;  %v841_v6 = vld [vmem:[%s317_s14 + $0x4] ss:$8 sps:$4 sm:$0xff]  }
  0x67   : > { %432 = vmatprep.subr.bf16.mxu0 %v835_v1  ;;  %520 = vmatprep.subr.bf16.mxu1 %v837_v2  ;;  %v843_v7 = vld [vmem:[%s326_s28 + $0x4] ss:$8 sps:$4 sm:$0xff]   ;;  %v845_v8 = vld [vmem:[%s317_s14] ss:$8 sps:$4 sm:$0xff]   ;;  %v847_v10 = vld [vmem:[#allocation2] sm:$0xff]   ;;  %s718_s29 = sshll.u32 %s1039_s24, 8 }
  0x68   : > { %433 = vmatpush1.bf16.msra.mxu0 %v839_v4  ;;  %521 = vmatpush1.bf16.msra.mxu1 %v840_v5  ;;  %v846_v9 = vld [vmem:[%s326_s28] ss:$8 sps:$4 sm:$0xff]   ;;  %v848_v11 = vld [vmem:[#allocation5] sm:$0xff]   ;;  %s368_s17 = sshra.s32 %s718_s29, 7  ;;  %v382_v13 = vshrl.u32 %v381_v12, 7  ;;  %p731_p6 = scmp.ne.s32.totalorder %s1039_s24, 1 }
  0x69   : > { %434 = vmatprep.subr.bf16.mxu0 %v841_v6  ;;  %522 = vmatprep.subr.bf16.mxu1 %v843_v7  ;;  %s370_s18 = scalar_lea.vmem %s1295_s4, %s368_s17  ;;  %s372_s8 = scalar_lea.vmem %s1296_s5, %s368_s17 }
  0x6a   : > { %v383_v14 = vsub.s32 0, %v382_v13  ;;  %v371_v15 = vld [vmem:[%s370_s18] sm:$0x3]  ;;  %v387_v17 = vsub.s32 1, %v382_v13 }
  0x6b   : > { %v373_v16 = vld [vmem:[%s372_s8] sm:$0x3]  ;;  %v557_v36 = vld [vmem:[#allocation9] sm:$0xff]  ;;  %v558_v45 = vld [vmem:[#allocation9 + $0x8] sm:$0xff] }
  0x6c   : > { %435 = vmatpush1.bf16.msra.mxu0 %v845_v8  ;;  %523 = vmatpush1.bf16.msra.mxu1 %v846_v9  ;;  %v384_v18 = vrot.slane %v371_v15, %v383_v14  ;;  %v473_v19 = vrot.slane %v373_v16, %v383_v14  ;;  %v388_v20 = vrot.slane %v371_v15, %v387_v17 }
  0x6d   : > { %v477_v21 = vrot.slane %v373_v16, %v387_v17 }
  0x6f   : > { %724 = vmatmul.mubr.msk.bf16.vlgmr.msra.gmra.mxu0 %vm416_vm0, %v847_v10  ;;  %730 = vmatmul.mubr.msk.bf16.vlgmr.msra.gmra.mxu1 %vm416_vm0, %v848_v11 }
 0x12f   : > { %v454_v22 = vpop.f32.mrf.mxu0  ;;  %v542_v23 = vpop.f32.mrf.mxu1 }
 0x130   : > { %v455_v24 = vadd.f32 %v454_v22, %v384_v18  ;;  %v543_v25 = vadd.f32 %v542_v23, %v473_v19 }
 0x131   : > { %v456_v26 = vpop.f32.mrf.mxu0  ;;  %v544_v27 = vpop.f32.mrf.mxu1 }
 0x132   : > { %v457_v28 = vadd.f32 %v456_v26, %v388_v20  ;;  %v545_v29 = vadd.f32 %v544_v27, %v477_v21  ;;  %v551_v32 = vmul.f32 %v543_v25, %v455_v24 }
 0x133   : > { %v458_v30 = vpop.f32.mrf.mxu0  ;;  %v546_v31 = vpop.f32.mrf.mxu1 }
 0x134   : > { %v552_v33 = vmul.f32 %v545_v29, %v457_v28  ;;  %v459_v34 = vadd.f32 %v458_v30, %v384_v18  ;;  %v547_v35 = vadd.f32 %v546_v31, %v473_v19 }
 0x135   : > { %v460_v37 = vpop.f32.mrf.mxu0  ;;  %v548_v38 = vpop.f32.mrf.mxu1 }
 0x136   : > { %v555_v39 = vadd.f32 %v552_v33, %v551_v32  ;;  %v461_v40 = vadd.f32 %v460_v37, %v388_v20  ;;  %v549_v41 = vadd.f32 %v548_v38, %v477_v21  ;;  %v553_v43 = vmul.f32 %v547_v35, %v459_v34 }
 0x138   : > { %v559_v42 = vadd.f32 %v557_v36, %v555_v39  ;;  %v554_v44 = vmul.f32 %v549_v41, %v461_v40 }
 0x13a   : > { %561 = vst [vmem:[#allocation9] sm:$0xff] %v559_v42  ;;  %v556_v46 = vadd.f32 %v554_v44, %v553_v43  ;;  %566 = sbr.rel (%p731_p6) target bundleno = 485 (0x1e5), region = 68 }
 0x13c   : > { %v560_v47 = vadd.f32 %v558_v45, %v556_v46 }
 0x13e   : > { %562 = vst [vmem:[#allocation9 + $0x8] sm:$0xff] %v560_v47 }
 0x141   : > { %v567_v48 = vld [vmem:[#allocation9] sm:$0xff] }
 0x142   : > { %v569_v50 = vmul.f32 %v567_v48, %v567_v48 }
 0x144   : > { %571 = vadd.xlane.f32.xlu0 %v569_v50 }
 0x145   : > { %v568_v49 = vld [vmem:[#allocation9 + $0x8] sm:$0xff] }
 0x146   : > { %v570_v51 = vmul.f32 %v568_v49, %v568_v49 }
 0x148   : > { %573 = vadd.xlane.f32.xlu0 %v570_v51 }
 0x1cd   : > { %v572_v52 = vpop.xlane.xlu0 %571 }
 0x1ce   : > { %v575_v53 = vmax.f32 %v572_v52, 1e-24 }
 0x1d0   : > { %849 = vrsqrt.f32 %v575_v53 }
 0x1d1   : > { %v574_v54 = vpop.xlane.xlu0 %573 }
 0x1d2   : > { %v576_v55 = vmax.f32 %v574_v54, 1e-24 }
 0x1d4   : > { %851 = vrsqrt.f32 %v576_v55 }
 0x1dd   : > { %v850_v56 = vpop.eup %849 }
 0x1de   : > { %v579_v57 = vmul.f32 %v850_v56, %v567_v48 }
 0x1e0   : > { %581 = vst [vmem:[#allocation9] sm:$0xff] %v579_v57 }
 0x1e1   : > { %v852_v58 = vpop.eup %851 }
 0x1e2   : > { %v580_v59 = vmul.f32 %v852_v58, %v568_v49 }
 0x1e4   : > { %582 = vst [vmem:[#allocation9 + $0x8] sm:$0xff] %v580_v59 }
 0x1e5 PF: > { %p773_p12 = scmp.eq.s32.totalorder %s1127_s27, 1  ;;  %s1060_s24 = smov [#allocation9]  }
 0x1e6   : > { %s592_s21 = sshll.u32 %s1060_s24, 4  ;;  %s593_s21 = int_to_ptr.vmem [resolvable:$true] %s592_s21 }
 0x1e7   : > { %s961_s16 = scalar_lea.vmem %s593_s21, 256  ;;  %p968_p0 = scmp.lt.s32.totalorder %s593_s21, %s593_s21 }
 0x1e8   : > { %p962_p3 = scmp.ne.s32.totalorder %s593_s21, %s961_s16  ;;  %p969_p1 = scmp.lt.s32.totalorder %s961_s16, %s961_s16 }
 0x1ea   : > { %p963_p13 = pnand %p962_p3, %p773_p12  ;;  %p970_p2 = por %p969_p1, %p968_p0 }
 0x1ec   : > { %p964_p4 = pneg %p963_p13 }
 0x1ee   : > { %p971_p5 = pnand %p970_p2, %p964_p4 }
 0x1f0   : > { %974 = shalt.err (!%p971_p5)
}
 0x1f1   : > { %s1061_s2 = smov 128   ;;  %s1062_s13 = smov 8  }
 0x1f2   : > { %751 = dma.vmem_to_hbm [thread:$0]  (%p773_p12), %s593_s21, 256, %s1297_s6, [#allocation4], %s1061_s2, %s1061_s2, %s1062_s13  }
 0x1f3   : > { %1022 = dma.done.wait (%p773_p12), [#allocation4], 256  }
 0x1f4   : > { %1024 = vsyncadd (%p773_p12), [#allocation4], 4294967040 }
 0x1f5 PF: > { %s19_s26 = sadd.s32 1, %s1047_s26   ;;  %s1318_s9 = sld [smem:[#allocation15_spill]] }
 0x1f6   : > { %p16_p11 = scmp.ge.s32.totalorder %s19_s26, 4   ;;  %s1319_s10 = sld [smem:[#allocation14_spill]] }
 0x1f7   : > { %s1320_s21 = smov %s1031_s22  ;;  %s1321_s22 = smov %s1035_s23 }
 0x1f8   : > { %s1323_s24 = smov %s1043_s25  ;;  %18 = sbr.rel (!%p16_p11) target bundleno = 8 (0x8), region = 112 }
 0x1fb   : > { %s1322_s23 = smov %s1318_s9 }
 0x1fc   : > { %s1324_s25 = smov %s1319_s10 }
 0x1fd   :  { %608 = vsyncpa [#allocation3], 1 }
 0x1fe   :  { %610 = vsyncpa [#allocation3 + $0x1], 1 }
 0x1ff   :  { %611 = vsyncpa [#allocation6], 1 }
 0x200   :  { %612 = vsyncpa [#allocation4], 1 }
 0x201   :  { %614 = vsyncpa [#allocation4 + $0x1], 1 }

</bundles_post_ra>
